<compile_context>
chip_gen: v7x
topology: tpu7x:2x2x1
jax: 0.10.0
libtpu: 0.0.40
codegen_flags: <defaults>
</compile_context>

<pallas_src>
import functools

import jax
import jax.numpy as jnp
from jax import lax
from jax.experimental import pallas as pl
from jax.experimental.pallas import tpu as pltpu

_HEAD_ORDER = ("what", "how", "if_can")
PAD_A = 128  # lane-dense padded width of the fused head output


def _dpo_fused_kernel(x_ref, w1_ref, b1_ref, w2_ref, b2_ref, wh_ref, bh_ref,
                      out_ref, *, segments, with_probs):
    """Fused MLP + packed 3-head projection (+ optional per-head masked softmax).

    x_ref:  (block_m, D)   bf16 state tile
    w*_ref: bf16 weights pre-transposed to (in, out); b*_ref: f32 (1, N) biases
    wh/bh:  the three heads concatenated along the output axis, zero-padded to 128 lanes
    out_ref: (block_m, 128) f32, lane-dense — logits or probabilities (static choice)
    """
    x = x_ref[...]                                                   # bf16
    h1 = jnp.dot(x, w1_ref[...], preferred_element_type=jnp.float32)
    h1 = jnp.maximum(h1 + b1_ref[...], 0.0)                          # f32
    h2 = jnp.dot(h1.astype(jnp.bfloat16), w2_ref[...],
                 preferred_element_type=jnp.float32)
    h2 = jnp.maximum(h2 + b2_ref[...], 0.0)                          # f32
    logits = jnp.dot(h2.astype(jnp.bfloat16), wh_ref[...],
                     preferred_element_type=jnp.float32) + bh_ref[...]

    if not with_probs:
        out_ref[...] = logits
        return

    # Fused softmax epilogue: each head occupies a disjoint static lane segment of the
    # padded 128-wide output; padding lanes contribute nothing.
    col = lax.broadcasted_iota(jnp.int32, logits.shape, 1)
    probs = jnp.zeros_like(logits)
    for (s, e) in segments:                        # static unroll over the 3 heads
        mask = (col >= s) & (col < e)
        seg = jnp.where(mask, logits, -jnp.inf)
        seg_max = jnp.max(seg, axis=-1, keepdims=True)        # XLU
        seg_exp = jnp.where(mask, jnp.exp(logits - seg_max), 0.0)   # EUP
        denom = jnp.sum(seg_exp, axis=-1, keepdims=True)      # XLU
        probs = probs + seg_exp * pl.reciprocal(denom, approx=True)  # EUP
    out_ref[...] = probs


def _head_segments(params):
    """(start, end) lane range of each head inside the packed 128-wide output."""
    segs, off = [], 0
    for h in _HEAD_ORDER:
        a = params[f"{h}_w"].shape[1]
        segs.append((off, off + a))
        off += a
    assert off <= PAD_A, "total action count must fit in one 128-lane tile"
    return tuple(segs)


def _head_index(question_type):
    if question_type == "what":
        return 0
    if question_type == "how":
        return 1
    return 2  # PyTorch `else` branch -> if_can_head


@functools.partial(jax.jit, static_argnames=("segments", "with_probs", "block_m"))
def _dpo_fused_forward(state, params, *, segments, with_probs, block_m=256):
    """One pallas_call producing the packed 128-lane head output for ALL heads."""
    B, D = state.shape
    H1 = params["w1"].shape[1]
    H2 = params["w2"].shape[1]

    # Pack the three heads into one lane-dense (H2, 128) weight / (1, 128) bias.
    wh = jnp.concatenate([params[f"{h}_w"] for h in _HEAD_ORDER], axis=1)
    bh = jnp.concatenate([params[f"{h}_b"] for h in _HEAD_ORDER], axis=0)
    total = wh.shape[1]
    wh = jnp.pad(wh, ((0, 0), (0, PAD_A - total)))
    bh = jnp.pad(bh, (0, PAD_A - total)).reshape(1, PAD_A)

    # bf16 on the MXU; biases / accumulation stay f32.
    state_bf = state.astype(jnp.bfloat16)
    w1 = params["w1"].astype(jnp.bfloat16)
    w2 = params["w2"].astype(jnp.bfloat16)
    wh = wh.astype(jnp.bfloat16)
    b1 = params["b1"].reshape(1, H1).astype(jnp.float32)
    b2 = params["b2"].reshape(1, H2).astype(jnp.float32)
    bh = bh.astype(jnp.float32)

    # Large batch tiles; pad the batch to a multiple of the tile (zero rows, sliced away).
    bm = block_m if B >= block_m else ((B + 7) // 8) * 8
    B_pad = ((B + bm - 1) // bm) * bm
    if B_pad != B:
        state_bf = jnp.pad(state_bf, ((0, B_pad - B), (0, 0)))
    grid = (B_pad // bm,)

    kernel = functools.partial(_dpo_fused_kernel, segments=segments,
                               with_probs=with_probs)
    rep = lambda i: (0, 0)  # weights / biases resident across batch tiles (no re-DMA)

    out = pl.pallas_call(
        kernel,
        out_shape=jax.ShapeDtypeStruct((B_pad, PAD_A), jnp.float32),
        grid_spec=pltpu.PrefetchScalarGridSpec(
            num_scalar_prefetch=0,
            grid=grid,
            in_specs=[
                pl.BlockSpec((bm, D), lambda i: (i, 0)),   # state tile (streamed)
                pl.BlockSpec((D, H1), rep),
                pl.BlockSpec((1, H1), rep),
                pl.BlockSpec((H1, H2), rep),
                pl.BlockSpec((1, H2), rep),
                pl.BlockSpec((H2, PAD_A), rep),
                pl.BlockSpec((1, PAD_A), rep),
            ],
            out_specs=pl.BlockSpec((bm, PAD_A), lambda i: (i, 0)),
        ),
        compiler_params=pltpu.CompilerParams(
            dimension_semantics=("parallel",)),
    )(state_bf, w1, b1, w2, b2, wh, bh)
    return out[:B]


def dpo_actor_forward(state, params, question_type, *, block_m=256):
    """Pallas implementation of DPOActorNetwork.forward (variant=None)."""
    segments = _head_segments(params)
    logits = _dpo_fused_forward(state, params, segments=segments,
                                with_probs=False, block_m=block_m)
    s, e = segments[_head_index(question_type)]
    return logits[:, s:e]


def get_action_probs(state, params, question_type, *, block_m=256):
    """Mirrors F.softmax(forward(...), dim=-1); softmax is fused into the kernel."""
    segments = _head_segments(params)
    probs = _dpo_fused_forward(state, params, segments=segments,
                               with_probs=True, block_m=block_m)
    s, e = segments[_head_index(question_type)]
    return probs[:, s:e]


def init_params(key, input_dim, action_counts):
    """Deterministic synthetic parameters matching nn.Linear shapes.

    PyTorch nn.Linear stores weight as (out, in); we store the transpose
    (in, out) so the kernel computes x @ W directly.
    """
    def linear(key, fan_in, fan_out):
        kw, kb = jax.random.split(key)
        bound = 1.0 / jnp.sqrt(fan_in)
        w = jax.random.uniform(kw, (fan_in, fan_out), jnp.float32, -bound, bound)
        b = jax.random.uniform(kb, (fan_out,), jnp.float32, -bound, bound)
        return w, b

    keys = jax.random.split(key, 6)
    w1, b1 = linear(keys[0], input_dim, 256)
    w2, b2 = linear(keys[1], 256, 128)
    ww, bw = linear(keys[2], 128, action_counts["what"])
    wh, bh = linear(keys[3], 128, action_counts["how"])
    wi, bi = linear(keys[4], 128, action_counts["if_can"])
    beta = jnp.float32(0.1)  # nn.Parameter(torch.tensor(0.1)); unused in forward
    return {
        "w1": w1, "b1": b1,
        "w2": w2, "b2": b2,
        "what_w": ww, "what_b": bw,
        "how_w": wh, "how_b": bh,
        "if_can_w": wi, "if_can_b": bi,
        "beta": beta,
    }


if __name__ == "__main__":
    import numpy as np

    key = jax.random.PRNGKey(0)
    k_params, k_state = jax.random.split(key)

    input_dim = 32
    batch = 16                        # small demo batch (one grid step)
    action_counts = {"what": 4, "how": 3, "if_can": 2}

    params = init_params(k_params, input_dim, action_counts)
    state = jax.random.normal(k_state, (batch, input_dim), jnp.float32)

    logits_what = dpo_actor_forward(state, params, "what")
    logits_how = dpo_actor_forward(state, params, "how")
    logits_ifcan = dpo_actor_forward(state, params, "if_can")
    probs_what = get_action_probs(state, params, "what")
    jax.block_until_ready((logits_what, logits_how, logits_ifcan, probs_what))

    # References: f32 (PyTorch semantics) and a bf16-matmul-matched variant
    # (the kernel's numeric contract: bf16 operands, f32 accumulation).
    def ref_f32(state, params, qt):
        h1 = jax.nn.relu(state @ params["w1"] + params["b1"])
        h2 = jax.nn.relu(h1 @ params["w2"] + params["b2"])
        k = qt if qt in ("what", "how") else "if_can"
        return h2 @ params[f"{k}_w"] + params[f"{k}_b"]

    def ref_bf16(state, params, qt):
        bf, f32 = jnp.bfloat16, jnp.float32
        h1 = jax.nn.relu(jnp.dot(state.astype(bf), params["w1"].astype(bf),
                                 preferred_element_type=f32) + params["b1"])
        h2 = jax.nn.relu(jnp.dot(h1.astype(bf), params["w2"].astype(bf),
                                 preferred_element_type=f32) + params["b2"])
        k = qt if qt in ("what", "how") else "if_can"
        return jnp.dot(h2.astype(bf), params[f"{k}_w"].astype(bf),
                       preferred_element_type=f32) + params[f"{k}_b"]

    for qt, got in (("what", logits_what), ("how", logits_how), ("if_can", logits_ifcan)):
        np.testing.assert_allclose(np.asarray(got), np.asarray(ref_bf16(state, params, qt)),
                                   rtol=5e-3, atol=5e-3)
        np.testing.assert_allclose(np.asarray(got), np.asarray(ref_f32(state, params, qt)),
                                   rtol=5e-2, atol=5e-2)

    np.testing.assert_allclose(np.asarray(probs_what),
                               np.asarray(jax.nn.softmax(ref_bf16(state, params, "what"), axis=-1)),
                               rtol=1e-2, atol=1e-2)

    print("KERNEL_OK")
</pallas_src>

<mosaic_0001>
module attributes {stable_mosaic.version = 11 : i64} {
  func.func @_dpo_fused_kernel(%arg0: i32, %arg1: memref<16x32xbf16, #tpu.memory_space<vmem>>, %arg2: memref<32x256xbf16, #tpu.memory_space<vmem>>, %arg3: memref<1x256xf32, #tpu.memory_space<vmem>>, %arg4: memref<256x128xbf16, #tpu.memory_space<vmem>>, %arg5: memref<1x128xf32, #tpu.memory_space<vmem>>, %arg6: memref<128x128xbf16, #tpu.memory_space<vmem>>, %arg7: memref<1x128xf32, #tpu.memory_space<vmem>>, %arg8: memref<16x128xf32, #tpu.memory_space<vmem>>) attributes {dimension_semantics = [#tpu.dimension_semantics<parallel>], iteration_bounds = array<i64: 1>, scalar_prefetch = 0 : i64, scratch_operands = 0 : i64, tpu.core_type = #tpu.core_type<tc>, window_params = [{transform_indices = @transform_0, window_bounds = array<i64: 16, 32>}, {pipeline_mode = #tpu.pipeline_mode<synchronous>, transform_indices = @transform_1, window_bounds = array<i64: 32, 256>}, {pipeline_mode = #tpu.pipeline_mode<synchronous>, transform_indices = @transform_2, window_bounds = array<i64: 1, 256>}, {pipeline_mode = #tpu.pipeline_mode<synchronous>, transform_indices = @transform_3, window_bounds = array<i64: 256, 128>}, {pipeline_mode = #tpu.pipeline_mode<synchronous>, transform_indices = @transform_4, window_bounds = array<i64: 1, 128>}, {pipeline_mode = #tpu.pipeline_mode<synchronous>, transform_indices = @transform_5, window_bounds = array<i64: 128, 128>}, {pipeline_mode = #tpu.pipeline_mode<synchronous>, transform_indices = @transform_6, window_bounds = array<i64: 1, 128>}, {transform_indices = @transform_7, window_bounds = array<i64: 16, 128>}]} {
    %c0 = arith.constant 0 : index
    %c0_0 = arith.constant 0 : index
    %0 = vector.load %arg1[%c0, %c0_0] : memref<16x32xbf16, #tpu.memory_space<vmem>>, vector<16x32xbf16>
    %c0_1 = arith.constant 0 : index
    %c0_2 = arith.constant 0 : index
    %1 = vector.load %arg2[%c0_1, %c0_2] : memref<32x256xbf16, #tpu.memory_space<vmem>>, vector<32x256xbf16>
    %cst = arith.constant dense<0.000000e+00> : vector<16x256xf32>
    %2 = tpu.matmul %0, %1, %cst {dimension_numbers = #tpu.dot_dimension_numbers<[1], [0], [0], [1], [0, 0, 1, 1], [], []>} : vector<16x32xbf16>, vector<32x256xbf16>, vector<16x256xf32> -> vector<16x256xf32>
    %c0_3 = arith.constant 0 : index
    %c0_4 = arith.constant 0 : index
    %3 = vector.load %arg3[%c0_3, %c0_4] : memref<1x256xf32, #tpu.memory_space<vmem>>, vector<1x256xf32>
    %4 = vector.broadcast %3 : vector<1x256xf32> to vector<16x256xf32>
    %5 = arith.addf %2, %4 : vector<16x256xf32>
    %cst_5 = arith.constant 0.000000e+00 : f32
    %6 = vector.broadcast %cst_5 : f32 to vector<16x256xf32>
    %7 = arith.maximumf %5, %6 : vector<16x256xf32>
    %8 = arith.truncf %7 : vector<16x256xf32> to vector<16x256xbf16>
    %c0_6 = arith.constant 0 : index
    %c0_7 = arith.constant 0 : index
    %9 = vector.load %arg4[%c0_6, %c0_7] : memref<256x128xbf16, #tpu.memory_space<vmem>>, vector<256x128xbf16>
    %cst_8 = arith.constant dense<0.000000e+00> : vector<16x128xf32>
    %10 = tpu.matmul %8, %9, %cst_8 {dimension_numbers = #tpu.dot_dimension_numbers<[1], [0], [0], [1], [0, 0, 1, 1], [], []>} : vector<16x256xbf16>, vector<256x128xbf16>, vector<16x128xf32> -> vector<16x128xf32>
    %c0_9 = arith.constant 0 : index
    %c0_10 = arith.constant 0 : index
    %11 = vector.load %arg5[%c0_9, %c0_10] : memref<1x128xf32, #tpu.memory_space<vmem>>, vector<1x128xf32>
    %12 = vector.broadcast %11 : vector<1x128xf32> to vector<16x128xf32>
    %13 = arith.addf %10, %12 : vector<16x128xf32>
    %cst_11 = arith.constant 0.000000e+00 : f32
    %14 = vector.broadcast %cst_11 : f32 to vector<16x128xf32>
    %15 = arith.maximumf %13, %14 : vector<16x128xf32>
    %16 = arith.truncf %15 : vector<16x128xf32> to vector<16x128xbf16>
    %c0_12 = arith.constant 0 : index
    %c0_13 = arith.constant 0 : index
    %17 = vector.load %arg6[%c0_12, %c0_13] : memref<128x128xbf16, #tpu.memory_space<vmem>>, vector<128x128xbf16>
    %cst_14 = arith.constant dense<0.000000e+00> : vector<16x128xf32>
    %18 = tpu.matmul %16, %17, %cst_14 {dimension_numbers = #tpu.dot_dimension_numbers<[1], [0], [0], [1], [0, 0, 1, 1], [], []>} : vector<16x128xbf16>, vector<128x128xbf16>, vector<16x128xf32> -> vector<16x128xf32>
    %c0_15 = arith.constant 0 : index
    %c0_16 = arith.constant 0 : index
    %19 = vector.load %arg7[%c0_15, %c0_16] : memref<1x128xf32, #tpu.memory_space<vmem>>, vector<1x128xf32>
    %20 = vector.broadcast %19 : vector<1x128xf32> to vector<16x128xf32>
    %21 = arith.addf %18, %20 : vector<16x128xf32>
    %c0_17 = arith.constant 0 : index
    %c0_18 = arith.constant 0 : index
    %22 = vector.load %arg8[%c0_17, %c0_18] : memref<16x128xf32, #tpu.memory_space<vmem>>, vector<16x128xf32>
    tpu.vector_store %arg8[%c0_17, %c0_18], %21 {strides = array<i32>} : memref<16x128xf32, #tpu.memory_space<vmem>>, vector<16x128xf32>,
    return
  }
  func.func @transform_0(%arg0: i32) -> (i32, i32) {
    %c0_i32 = arith.constant 0 : i32
    %c0_i32_0 = arith.constant 0 : i32
    return %arg0, %c0_i32 : i32, i32
  }
  func.func @transform_1(%arg0: i32) -> (i32, i32) {
    %c0_i32 = arith.constant 0 : i32
    %c0_i32_0 = arith.constant 0 : i32
    %c0_i32_1 = arith.constant 0 : i32
    return %c0_i32, %c0_i32_0 : i32, i32
  }
  func.func @transform_2(%arg0: i32) -> (i32, i32) {
    %c0_i32 = arith.constant 0 : i32
    %c0_i32_0 = arith.constant 0 : i32
    %c0_i32_1 = arith.constant 0 : i32
    return %c0_i32, %c0_i32_0 : i32, i32
  }
  func.func @transform_3(%arg0: i32) -> (i32, i32) {
    %c0_i32 = arith.constant 0 : i32
    %c0_i32_0 = arith.constant 0 : i32
    %c0_i32_1 = arith.constant 0 : i32
    return %c0_i32, %c0_i32_0 : i32, i32
  }
  func.func @transform_4(%arg0: i32) -> (i32, i32) {
    %c0_i32 = arith.constant 0 : i32
    %c0_i32_0 = arith.constant 0 : i32
    %c0_i32_1 = arith.constant 0 : i32
    return %c0_i32, %c0_i32_0 : i32, i32
  }
  func.func @transform_5(%arg0: i32) -> (i32, i32) {
    %c0_i32 = arith.constant 0 : i32
    %c0_i32_0 = arith.constant 0 : i32
    %c0_i32_1 = arith.constant 0 : i32
    return %c0_i32, %c0_i32_0 : i32, i32
  }
  func.func @transform_6(%arg0: i32) -> (i32, i32) {
    %c0_i32 = arith.constant 0 : i32
    %c0_i32_0 = arith.constant 0 : i32
    %c0_i32_1 = arith.constant 0 : i32
    return %c0_i32, %c0_i32_0 : i32, i32
  }
  func.func @transform_7(%arg0: i32) -> (i32, i32) {
    %c0_i32 = arith.constant 0 : i32
    %c0_i32_0 = arith.constant 0 : i32
    return %arg0, %c0_i32 : i32, i32
  }
}

</mosaic_0001>

<bundles_post_ra>
// kernel: _dpo_fused_forward.1
= control target key start
LH: loop header
LB: loop body
LE: loop exit
PB: predicated region body
PF: predicated region fallthrough
CT: control target
= control target key end

     0   :  { %v577_v2 = vmov 0   ;;  %vm71_vm0 = vcmask 261120   ;;  %s731_s0 = inlined_call_operand.vmem [shape: bf16[16,32], index: 0, kind: input, shape index: {}]   ;;  %s732_s1 = inlined_call_operand.vmem [shape: bf16[32,256], index: 1, kind: input, shape index: {}]   ;;  %s733_s2 = inlined_call_operand.vmem [shape: f32[1,256], index: 2, kind: input, shape index: {}]   ;;  %s734_s3 = inlined_call_operand.vmem [shape: bf16[256,128], index: 3, kind: input, shape index: {}]   ;;  %s735_s4 = inlined_call_operand.vmem [shape: f32[1,128], index: 4, kind: input, shape index: {}]   ;;  %s736_s5 = inlined_call_operand.vmem [shape: bf16[128,128], index: 5, kind: input, shape index: {}]   ;;  %s737_s6 = inlined_call_operand.vmem [shape: f32[1,128], index: 6, kind: input, shape index: {}]   ;;  %s738_s7 = inlined_call_operand.hbm [shape: f32[16,128], index: 7, kind: output, shape index: {}]  }
   0x1   :  { %v522_v0 = vld [vmem:[%s732_s1 + $0x4] ss:$8 sps:$4 sm:$0xff]   ;;  %v524_v1 = vld [vmem:[%s732_s1] ss:$8 sps:$4 sm:$0xff]   ;;  %107 = vmatprep.mubr.bf16.mxu0 %v577_v2  ;;  %v525_v3 = vld [vmem:[%s732_s1 + $0x14] ss:$8 sps:$4 sm:$0xff]  }
   0x2   :  { %75 = vmatprep.subr.bf16.mxu0 %v522_v0  ;;  %v527_v4 = vld [vmem:[%s732_s1 + $0x10] ss:$8 sps:$4 sm:$0xff]   ;;  %v528_v5 = vld [vmem:[%s731_s0] sm:$0xff]   ;;  %v531_v8 = vld [vmem:[%s734_s3 + $0x48] sm:$0xff]  }
   0x3   :  { %76 = vmatpush1.bf16.msra.mxu0 %v524_v1  ;;  %v529_v6 = vld [vmem:[%s734_s3 + $0x40] sm:$0xff]   ;;  %v532_v9 = vld [vmem:[%s734_s3 + $0x8] sm:$0xff]   ;;  %v533_v10 = vld [vmem:[%s734_s3 + $0x50] sm:$0xff]  }
   0x4   :  { %77 = vmatprep.subr.bf16.mxu0 %v525_v3  ;;  %v530_v7 = vld [vmem:[%s734_s3] sm:$0xff]   ;;  %465 = vmatprep.subr.bf16.mxu1 %v529_v6  ;;  %v534_v11 = vld [vmem:[%s734_s3 + $0x10] sm:$0xff]   ;;  %v535_v12 = vld [vmem:[%s734_s3 + $0x58] sm:$0xff]  }
   0x5   :  { %466 = vmatpush3.bf16.msra.mxu1 %v530_v7  ;;  %v536_v13 = vld [vmem:[%s734_s3 + $0x18] sm:$0xff]   ;;  %v537_v14 = vld [vmem:[%s734_s3 + $0x60] sm:$0xff]   ;;  %v539_v16 = vld [vmem:[%s734_s3 + $0x68] sm:$0xff]  }
   0x6   :  { %467 = vmatprep.subr.bf16.mxu1 %v531_v8  ;;  %v538_v15 = vld [vmem:[%s734_s3 + $0x20] sm:$0xff]  }
   0x7   :  { %78 = vmatpush1.bf16.msra.mxu0 %v527_v4 }
   0x9   :  { %468 = vmatpush3.bf16.msra.mxu1 %v532_v9 }
   0xa   :  { %438 = vmatmul.mubr.msk.bf16.vlgmr.msra.gmra.mrb[0].mxu0 %vm71_vm0, %v528_v5  ;;  %469 = vmatprep.subr.bf16.mxu1 %v533_v10 }
   0xd   :  { %470 = vmatpush3.bf16.msra.mxu1 %v534_v11 }
   0xe   :  { %471 = vmatprep.subr.bf16.mxu1 %v535_v12 }
  0x11   :  { %472 = vmatpush3.bf16.msra.mxu1 %v536_v13 }
  0x12   :  { %473 = vmatprep.subr.bf16.mxu1 %v537_v14 }
  0x15   :  { %474 = vmatpush3.bf16.msra.mxu1 %v538_v15 }
  0x16   :  { %12 = vsyncpa [#allocation3], 0  ;;  %475 = vmatprep.subr.bf16.mxu1 %v539_v16  ;;  %v540_v17 = vld [vmem:[%s734_s3 + $0x28] sm:$0xff]   ;;  %v541_v18 = vld [vmem:[%s734_s3 + $0x70] sm:$0xff]   ;;  %v578_v23 = vmov 0.0   ;;  %v36_v28 = vlaneseq  ;;  %vm579_vm1 = vmmov 0  }
  0x17   :  { %v542_v19 = vld [vmem:[%s734_s3 + $0x30] sm:$0xff]   ;;  %v543_v20 = vld [vmem:[%s734_s3 + $0x78] sm:$0xff]   ;;  %v545_v22 = vld [vmem:[%s736_s5] sm:$0xff]   ;;  %496 = vmatprep.subr.bf16.mxu0 %v578_v23  ;;  %512 = vmatprep.mubr.msk.bf16.mxu0 %vm579_vm1, %v578_v23  ;;  %s580_s12 = smov [#allocation2]  }
  0x18   :  { %v544_v21 = vld [vmem:[%s734_s3 + $0x38] sm:$0xff]   ;;  %497 = vmatpush3.bf16.msra.mxu0 %v545_v22  ;;  %v546_v24 = vld [vmem:[%s736_s5 + $0x8] sm:$0xff]   ;;  %v547_v25 = vld [vmem:[%s736_s5 + $0x10] sm:$0xff]   ;;  %v37_v29 = vshrl.u32 %v36_v28, 7  ;;  %s422_s13 = sshll.u32 %s580_s12, 4  ;;  %s423_s13 = int_to_ptr.vmem [resolvable:$true] %s422_s13 }
  0x19   :  { %476 = vmatpush3.bf16.msra.mxu1 %v540_v17  ;;  %498 = vmatprep.subr.bf16.mxu0 %v578_v23  ;;  %v548_v26 = vld [vmem:[%s736_s5 + $0x18] sm:$0xff]   ;;  %v549_v27 = vld [vmem:[%s736_s5 + $0x20] sm:$0xff]   ;;  %v550_v49 = vld [vmem:[%s736_s5 + $0x28] sm:$0xff]   ;;  %p558_p1 = scmp.lt.s32.totalorder %s423_s13, %s423_s13 }
  0x1a   :  { %477 = vmatprep.subr.bf16.mxu1 %v541_v18  ;;  %v38_v30 = vsub.s32 0, %v37_v29  ;;  %v34_v31 = vld [vmem:[%s733_s2] sm:$0x3]  ;;  %v42_v32 = vsub.s32 1, %v37_v29  ;;  %v551_v50 = vld [vmem:[%s736_s5 + $0x30] sm:$0xff]   ;;  %v552_v51 = vld [vmem:[%s736_s5 + $0x38] sm:$0xff]  }
  0x1b   :  { %v439_v53 = vld [vmem:[%s735_s4] ss:$0 sm:$0xff]  ;;  %s553_s4 = scalar_lea.vmem %s423_s13, 256 }
  0x1c   :  { %499 = vmatpush3.bf16.msra.mxu0 %v546_v24  ;;  %v39_v33 = vrot.slane %v34_v31, %v38_v30  ;;  %v43_v34 = vrot.slane %v34_v31, %v42_v32  ;;  %v456_v0 = vld [vmem:[%s737_s6] ss:$0 sm:$0xff]  ;;  %p554_p0 = scmp.ne.s32.totalorder %s423_s13, %s553_s4  ;;  %p559_p2 = scmp.lt.s32.totalorder %s553_s4, %s553_s4 }
  0x1d   :  { %478 = vmatpush3.bf16.msra.mxu1 %v542_v19  ;;  %500 = vmatprep.subr.bf16.mxu0 %v578_v23 }
  0x1e   :  { %479 = vmatprep.subr.bf16.mxu1 %v543_v20  ;;  %p560_p3 = por %p559_p2, %p558_p1 }
  0x20   :  { %501 = vmatpush3.bf16.msra.mxu0 %v547_v25  ;;  %p561_p4 = pnand %p560_p3, %p554_p0 }
  0x21   :  { %480 = vmatpush3.bf16.msra.mxu1 %v544_v21  ;;  %502 = vmatprep.subr.bf16.mxu0 %v578_v23 }
  0x24   :  { %503 = vmatpush3.bf16.msra.mxu0 %v548_v26 }
  0x25   :  { %504 = vmatprep.subr.bf16.mxu0 %v578_v23 }
  0x28   :  { %505 = vmatpush3.bf16.msra.mxu0 %v549_v27 }
  0x29   :  { %506 = vmatprep.subr.bf16.mxu0 %v578_v23 }
  0x2c   :  { %507 = vmatpush3.bf16.msra.mxu0 %v550_v49 }
  0x2d   :  { %508 = vmatprep.subr.bf16.mxu0 %v578_v23 }
  0x30   :  { %509 = vmatpush3.bf16.msra.mxu0 %v551_v50 }
  0x31   :  { %510 = vmatprep.subr.bf16.mxu0 %v578_v23 }
  0x34   :  { %511 = vmatpush3.bf16.msra.mxu0 %v552_v51 }
  0xdd   :  { %v109_v35 = vpop.f32.mrb[0].mxu0 }
  0xde   :  { %v110_v36 = vadd.f32 %v109_v35, %v39_v33  ;;  %v111_v37 = vpop.f32.mrb[1].mxu0 }
  0xdf   :  { %v112_v38 = vadd.f32 %v111_v37, %v43_v34  ;;  %v113_v39 = vpop.f32.mrb[2].mxu0 }
  0xe0   :  { %v114_v40 = vadd.f32 %v113_v39, %v39_v33  ;;  %v115_v41 = vpop.f32.mrb[3].mxu0  ;;  %v118_v43 = vmax.f32 %v110_v36, 0.0 }
  0xe1   :  { %v116_v42 = vadd.f32 %v115_v41, %v43_v34  ;;  %v119_v45 = vmax.f32 %v112_v38, 0.0 }
  0xe2   :  { %v120_v44 = vmax.f32 %v114_v40, 0.0 }
  0xe3   :  { %v121_v46 = vmax.f32 %v116_v42, 0.0 }
  0xe4   :  { %v122_v47 = vpack.c.bf16 %v120_v44, %v118_v43 }
  0xe5   :  { %v123_v48 = vpack.c.bf16 %v121_v46, %v119_v45 }
  0xe7   :  { %291 = vmatprep.mubr.bf16.mxu1 %v123_v48 }
  0xe8   :  { %292 = vmatmul.mubr.bf16.vlgmr.msra.gmra.mrb[0].mxu1 %v122_v47 }
 0x1bb   :  { %v481_v52 = vpop.f32.mrb[0].mxu1 }
 0x1bc   :  { %v482_v54 = vpop.f32.mrb[1].mxu1 }
 0x1bd   :  { %v483_v55 = vadd.f32 %v482_v54, %v481_v52  ;;  %v484_v56 = vpop.f32.mrb[2].mxu1 }
 0x1be   :  { %v485_v57 = vpop.f32.mrb[3].mxu1 }
 0x1bf   :  { %v294_v58 = vadd.f32 %v483_v55, %v439_v53  ;;  %v486_v59 = vadd.f32 %v485_v57, %v484_v56 }
 0x1c1   :  { %v297_v60 = vadd.f32 %v486_v59, %v439_v53  ;;  %v300_v61 = vmax.f32 %v294_v58, 0.0 }
 0x1c3   :  { %v301_v62 = vmax.f32 %v297_v60, 0.0 }
 0x1c5   :  { %v302_v63 = vpack.c.bf16 %v301_v62, %v300_v61 }
 0x1c7   :  { %513 = vmatmul.mubr.bf16.vlgmr.msra.gmra.mrb[4].mxu0 %v302_v63 }
 0x29a   :  { %v408_v1 = vpop.f32.mrb[4].mxu0 }
 0x29b   :  { %v409_v2 = vadd.f32 %v456_v0, %v408_v1  ;;  %v514_v3 = vpop.f32.mrb[5].mxu0 }
 0x29c   :  { %v411_v4 = vpop.f32.mrb[6].mxu0 }
 0x29d   :  { %415 = vst [vmem:[#allocation2] sm:$0xff] %v409_v2  ;;  %v412_v5 = vadd.f32 %v456_v0, %v411_v4  ;;  %v515_v6 = vpop.f32.mrb[7].mxu0 }
 0x29f   :  { %416 = vst [vmem:[#allocation2 + $0x8] sm:$0xff] %v412_v5 }
 0x2a0   :  { %564 = shalt.err (!%p561_p4)
}
 0x2a1   :  { %s565_s15 = scalar_lea.hbm %s738_s7, 256 }
 0x2a2   :  { %p566_p5 = scmp.ne.s32.totalorder %s738_s7, %s565_s15  ;;  %p569_p6 = scmp.lt.u32.totalorder %s565_s15, %s738_s7 }
 0x2a4   :  { %p571_p7 = pnand %p569_p6, %p566_p5 }
 0x2a6   :  { %574 = shalt.err (!%p571_p7)
}
 0x2a7   :  { %s581_s18 = smov 128   ;;  %s582_s19 = smov 8  }
 0x2a8   :  { %428 = dma.vmem_to_hbm [thread:$0]  %s423_s13, 256, %s738_s7, [#allocation3], %s581_s18, %s581_s18, %s582_s19  }
 0x2a9   :  { %575 = dma.done.wait [#allocation3], 256  }
 0x2aa   :  { %576 = vsyncadd [#allocation3], 4294967040 }
 0x2ab   :  { %432 = vsyncpa [#allocation3], 1 }

</bundles_post_ra>
